<compile_context>
chip_gen: v5e
topology: v5e:2x2
jax: 0.10.0
libtpu: 0.0.40
codegen_flags: <defaults>
</compile_context>

<pallas_src>
import jax
import jax.numpy as jnp
from jax.experimental import pallas as pl
from jax.experimental.pallas import tpu as pltpu

LOG_SIG_MAX = 2.0
LOG_SIG_MIN = -20.0

HIDDEN_ARR = [500, 100, 50, 9]
NUM_INPUTS = 32       # small synthetic state size (module flattens its input)
NUM_ACTIONS = 2
DIM_FEATS = 3
INIT_W = 0.003

# packed / fused / padded sizes (lane multiples of 128, exact zero padding)
PACK_W = 128          # packed input: state cols [0:32), dim cols [32:35), zeros
PACK_DIM_OFF = NUM_INPUTS
H1P = 512             # 500 -> 512
H2P = 128             # 100 -> 128
H3P = 128             # 2 * 50 = 100 -> 128  (mean cols [0:50], std cols [50:100])
H4P = 128             # 2 * 9  = 18  -> 128  (mean cols [0:9],  std cols [9:18])
OUT_W = 8             # [mean 0:2 | log_std 2:4 | zeros]


def _round_up(x, m):
    return ((x + m - 1) // m) * m


# -----------------------------------------------------------------------------
# Kernel
# -----------------------------------------------------------------------------
def policy_kernel(x_ref,
                  w1_ref, b1_ref, w2_ref, b2_ref, w3_ref, b3_ref,
                  w4_ref, b4_ref, w5f_ref, w5d_ref, b5_ref,
                  out_ref):
    bf16 = jnp.bfloat16
    f32 = jnp.float32

    def dense_relu(a_bf16, w_ref, b_ref):
        acc = jnp.dot(a_bf16, w_ref[...], preferred_element_type=f32)
        # cast to bf16 right after the relu: halves activation footprint /
        # store pressure (dot inputs were bf16 anyway), accumulation stays f32.
        return jnp.maximum(acc + b_ref[...], 0.0).astype(bf16)

    x = x_ref[...]                                       # [TB, 128] f32 packed
    h = dense_relu(x.astype(bf16), w1_ref, b1_ref)       # [TB, 512] shared trunk
    h = dense_relu(h, w2_ref, b2_ref)                    # [TB, 128]
    h = dense_relu(h, w3_ref, b3_ref)                    # [TB, 128] fused mean|std
    h = dense_relu(h, w4_ref, b4_ref)                    # [TB, 128] fused mean|std

    # final layer in f32 (tiny weights ~1e-3: keep full precision; dim part is
    # a full-width dot against a mostly-zero W5D so no lane slicing is needed)
    out = (jnp.dot(h.astype(f32), w5f_ref[...], preferred_element_type=f32)
           + jnp.dot(x, w5d_ref[...], preferred_element_type=f32)
           + b5_ref[...])                                # [TB, 8]

    # clamp only the log_std columns (cols >= NUM_ACTIONS); mean cols untouched.
    col = jax.lax.broadcasted_iota(jnp.int32, out.shape, 1)
    clipped = jnp.clip(out, LOG_SIG_MIN, LOG_SIG_MAX)
    out_ref[...] = jnp.where(col < NUM_ACTIONS, out, clipped)


# -----------------------------------------------------------------------------
# Wrapper
# -----------------------------------------------------------------------------
def stochastic_policy_forward(state, dim, fused_params, *, batch_tile=2048):
    B = state.shape[0]
    # Aim for a ~2-step grid (both TensorCores on v7x) with tiles capped at
    # batch_tile; grid handles the ragged last tile (no batch padding).
    TB = max(8, min(batch_tile, _round_up(pl.cdiv(B, 2), 8)))
    grid = (pl.cdiv(B, TB),)

    # single lane-dense packed input (one construction, fuses under jit)
    x = jnp.zeros((B, PACK_W), jnp.float32)
    x = x.at[:, :NUM_INPUTS].set(state.astype(jnp.float32))
    x = x.at[:, PACK_DIM_OFF:PACK_DIM_OFF + DIM_FEATS].set(
        dim.astype(jnp.float32))

    def resident_spec(arr):
        # weights/biases: full-array block, constant index_map -> VMEM-resident
        return pl.BlockSpec(arr.shape, lambda i: (0, 0))

    in_specs = ([pl.BlockSpec((TB, PACK_W), lambda i: (i, 0))]
                + [resident_spec(p) for p in fused_params])

    out = pl.pallas_call(
        policy_kernel,
        out_shape=jax.ShapeDtypeStruct((B, OUT_W), jnp.float32),
        grid=grid,
        in_specs=in_specs,
        out_specs=pl.BlockSpec((TB, OUT_W), lambda i: (i, 0)),
        compiler_params=pltpu.CompilerParams(
            dimension_semantics=("parallel",)),   # v7x: shard batch on 2 TCs
    )(x, *fused_params)

    mean = out[:, :NUM_ACTIONS]
    log_std = out[:, NUM_ACTIONS:2 * NUM_ACTIONS]
    return mean, log_std


# -----------------------------------------------------------------------------
# Parameter init (deterministic, matches torch module's layer structure)
# -----------------------------------------------------------------------------
def init_params(key):
    def xavier(k, fan_in, fan_out):
        a = (6.0 / (fan_in + fan_out)) ** 0.5
        return jax.random.uniform(k, (fan_in, fan_out), jnp.float32, -a, a)

    def small(k, fan_in, fan_out):
        return jax.random.uniform(k, (fan_in, fan_out), jnp.float32,
                                  -INIT_W, INIT_W)

    h = HIDDEN_ARR
    keys = jax.random.split(key, 10)

    # raw (original-shape) weights; biases of layers 1-4 are zero (torch init)
    w1 = xavier(keys[0], NUM_INPUTS, h[0])
    w2 = xavier(keys[1], h[0], h[1])
    w3m = xavier(keys[2], h[1], h[2])
    w4m = xavier(keys[3], h[2], h[3])
    w5m = small(keys[4], h[3] + DIM_FEATS, NUM_ACTIONS)
    b5m = jax.random.uniform(keys[5], (1, NUM_ACTIONS), jnp.float32,
                             -INIT_W, INIT_W)
    w3s = xavier(keys[6], h[1], h[2])
    w4s = xavier(keys[7], h[2], h[3])
    w5s = small(keys[8], h[3] + DIM_FEATS, NUM_ACTIONS)
    b5s = jax.random.uniform(keys[9], (1, NUM_ACTIONS), jnp.float32,
                             -INIT_W, INIT_W)

    raw = dict(w1=w1, w2=w2, w3m=w3m, w4m=w4m, w5m=w5m, b5m=b5m,
               w3s=w3s, w4s=w4s, w5s=w5s, b5s=b5s)

    # ---- fused + zero-padded (padding regions are exact zeros) ----
    bf16 = jnp.bfloat16
    f32 = jnp.float32
    # layer 1: packed-input width 128; dim rows (32:35) are zero (dim skips it)
    W1 = jnp.zeros((PACK_W, H1P), f32).at[:NUM_INPUTS, :h[0]].set(w1)
    B1 = jnp.zeros((1, H1P), f32)
    W2 = jnp.zeros((H1P, H2P), f32).at[:h[0], :h[1]].set(w2)
    B2 = jnp.zeros((1, H2P), f32)
    # layer 3: concat along outputs -> [mean | std]
    W3 = (jnp.zeros((H2P, H3P), f32)
          .at[:h[1], :h[2]].set(w3m)
          .at[:h[1], h[2]:2 * h[2]].set(w3s))
    B3 = jnp.zeros((1, H3P), f32)
    # layer 4: block-diagonal
    W4 = (jnp.zeros((H3P, H4P), f32)
          .at[:h[2], :h[3]].set(w4m)
          .at[h[2]:2 * h[2], h[3]:2 * h[3]].set(w4s))
    B4 = jnp.zeros((1, H4P), f32)
    # layer 5 (kept f32): feature part (block-diagonal) ...
    W5F = (jnp.zeros((H4P, OUT_W), f32)
           .at[:h[3], :NUM_ACTIONS].set(w5m[:h[3]])
           .at[h[3]:2 * h[3], NUM_ACTIONS:2 * NUM_ACTIONS].set(w5s[:h[3]]))
    # ... + shared dim part, addressed against the full packed input (only the
    # dim rows 32:35 are non-zero, so x @ W5D == dim @ w5[9:]).
    W5D = (jnp.zeros((PACK_W, OUT_W), f32)
           .at[PACK_DIM_OFF:PACK_DIM_OFF + DIM_FEATS, :NUM_ACTIONS]
           .set(w5m[h[3]:])
           .at[PACK_DIM_OFF:PACK_DIM_OFF + DIM_FEATS,
               NUM_ACTIONS:2 * NUM_ACTIONS].set(w5s[h[3]:]))
    B5 = (jnp.zeros((1, OUT_W), f32)
          .at[:, :NUM_ACTIONS].set(b5m)
          .at[:, NUM_ACTIONS:2 * NUM_ACTIONS].set(b5s))

    fused = (W1.astype(bf16), B1, W2.astype(bf16), B2,
             W3.astype(bf16), B3, W4.astype(bf16), B4,
             W5F, W5D, B5)
    return raw, fused


# -----------------------------------------------------------------------------
# References
# -----------------------------------------------------------------------------
def reference_fused(state, dim, fused):
    """Same fused/packed math & mixed precision as the kernel (tight check)."""
    (W1, B1, W2, B2, W3, B3, W4, B4, W5F, W5D, B5) = fused
    bf16, f32 = jnp.bfloat16, jnp.float32
    B = state.shape[0]
    x = jnp.zeros((B, PACK_W), f32)
    x = x.at[:, :NUM_INPUTS].set(state.astype(f32))
    x = x.at[:, PACK_DIM_OFF:PACK_DIM_OFF + DIM_FEATS].set(dim.astype(f32))

    def dense_relu(a, w, b):
        acc = jnp.dot(a, w, preferred_element_type=f32)
        return jnp.maximum(acc + b, 0.0).astype(bf16)

    h = dense_relu(x.astype(bf16), W1, B1)
    h = dense_relu(h, W2, B2)
    h = dense_relu(h, W3, B3)
    h = dense_relu(h, W4, B4)
    out = (jnp.dot(h.astype(f32), W5F, preferred_element_type=f32)
           + jnp.dot(x, W5D, preferred_element_type=f32) + B5)
    mean = out[:, :NUM_ACTIONS]
    log_std = jnp.clip(out[:, NUM_ACTIONS:2 * NUM_ACTIONS],
                       LOG_SIG_MIN, LOG_SIG_MAX)
    return mean, log_std


def reference_unfused(state, dim, raw):
    """Original (unfused, f32) module math — semantic check."""
    h = jnp.maximum(state @ raw["w1"], 0.0)
    h = jnp.maximum(h @ raw["w2"], 0.0)
    m = jnp.maximum(h @ raw["w3m"], 0.0)
    m = jnp.maximum(m @ raw["w4m"], 0.0)
    mean = jnp.concatenate([m, dim], axis=1) @ raw["w5m"] + raw["b5m"]
    s = jnp.maximum(h @ raw["w3s"], 0.0)
    s = jnp.maximum(s @ raw["w4s"], 0.0)
    log_std = jnp.concatenate([s, dim], axis=1) @ raw["w5s"] + raw["b5s"]
    return mean, jnp.clip(log_std, LOG_SIG_MIN, LOG_SIG_MAX)


if __name__ == "__main__":
    key = jax.random.PRNGKey(0)
    k_state, k_dim, k_params = jax.random.split(key, 3)
    raw, fused = init_params(k_params)

    forward = jax.jit(stochastic_policy_forward,
                      static_argnames=("batch_tile",))

    # --- small batch (single ragged tile) ---
    B = 2
    state = jax.random.normal(k_state, (B, NUM_INPUTS), jnp.float32)
    dim = jax.random.normal(k_dim, (B, DIM_FEATS), jnp.float32)

    mean, log_std = forward(state, dim, fused)
    mean = jax.block_until_ready(mean)
    log_std = jax.block_until_ready(log_std)
    assert mean.shape == (B, NUM_ACTIONS) and log_std.shape == (B, NUM_ACTIONS)

    # 1) tight check vs a pure-JAX reference using identical fused math/dtypes
    ref_mean_f, ref_log_std_f = reference_fused(state, dim, fused)
    assert jnp.allclose(mean, ref_mean_f, atol=1e-4, rtol=1e-3)
    assert jnp.allclose(log_std, ref_log_std_f, atol=1e-4, rtol=1e-3)

    # 2) semantic check vs the original unfused f32 module math
    #    (looser tolerance: bf16 trunk-weight/activation rounding)
    ref_mean, ref_log_std = reference_unfused(state, dim, raw)
    assert jnp.allclose(mean, ref_mean, atol=2e-3, rtol=1e-2)
    assert jnp.allclose(log_std, ref_log_std, atol=2e-3, rtol=1e-2)

    # --- non-multiple batch: 2-step grid + ragged last tile (v7x 2-TC path) ---
    B2 = 37
    state2 = jax.random.normal(k_state, (B2, NUM_INPUTS), jnp.float32)
    dim2 = jax.random.normal(k_dim, (B2, DIM_FEATS), jnp.float32)
    mean2, log_std2 = forward(state2, dim2, fused)
    mean2 = jax.block_until_ready(mean2)
    rm2, rl2 = reference_fused(state2, dim2, fused)
    assert jnp.allclose(mean2, rm2, atol=1e-4, rtol=1e-3)
    assert jnp.allclose(log_std2, rl2, atol=1e-4, rtol=1e-3)

    print("KERNEL_OK")
</pallas_src>

<mosaic_0001>
module attributes {stable_mosaic.version = 11 : i64} {
  func.func @policy_kernel(%arg0: i32, %arg1: memref<8x128xf32, #tpu.memory_space<vmem>>, %arg2: memref<128x512xbf16, #tpu.memory_space<vmem>>, %arg3: memref<1x512xf32, #tpu.memory_space<vmem>>, %arg4: memref<512x128xbf16, #tpu.memory_space<vmem>>, %arg5: memref<1x128xf32, #tpu.memory_space<vmem>>, %arg6: memref<128x128xbf16, #tpu.memory_space<vmem>>, %arg7: memref<1x128xf32, #tpu.memory_space<vmem>>, %arg8: memref<128x128xbf16, #tpu.memory_space<vmem>>, %arg9: memref<1x128xf32, #tpu.memory_space<vmem>>, %arg10: memref<128x8xf32, #tpu.memory_space<vmem>>, %arg11: memref<128x8xf32, #tpu.memory_space<vmem>>, %arg12: memref<1x8xf32, #tpu.memory_space<vmem>>, %arg13: memref<8x8xf32, #tpu.memory_space<vmem>>) attributes {dimension_semantics = [#tpu.dimension_semantics<parallel>], iteration_bounds = array<i64: 1>, scalar_prefetch = 0 : i64, scratch_operands = 0 : i64, tpu.core_type = #tpu.core_type<tc>, window_params = [{transform_indices = @transform_0, window_bounds = array<i64: 8, 128>}, {pipeline_mode = #tpu.pipeline_mode<synchronous>, transform_indices = @transform_1, window_bounds = array<i64: 128, 512>}, {pipeline_mode = #tpu.pipeline_mode<synchronous>, transform_indices = @transform_2, window_bounds = array<i64: 1, 512>}, {pipeline_mode = #tpu.pipeline_mode<synchronous>, transform_indices = @transform_3, window_bounds = array<i64: 512, 128>}, {pipeline_mode = #tpu.pipeline_mode<synchronous>, transform_indices = @transform_4, window_bounds = array<i64: 1, 128>}, {pipeline_mode = #tpu.pipeline_mode<synchronous>, transform_indices = @transform_5, window_bounds = array<i64: 128, 128>}, {pipeline_mode = #tpu.pipeline_mode<synchronous>, transform_indices = @transform_6, window_bounds = array<i64: 1, 128>}, {pipeline_mode = #tpu.pipeline_mode<synchronous>, transform_indices = @transform_7, window_bounds = array<i64: 128, 128>}, {pipeline_mode = #tpu.pipeline_mode<synchronous>, transform_indices = @transform_8, window_bounds = array<i64: 1, 128>}, {pipeline_mode = #tpu.pipeline_mode<synchronous>, transform_indices = @transform_9, window_bounds = array<i64: 128, 8>}, {pipeline_mode = #tpu.pipeline_mode<synchronous>, transform_indices = @transform_10, window_bounds = array<i64: 128, 8>}, {pipeline_mode = #tpu.pipeline_mode<synchronous>, transform_indices = @transform_11, window_bounds = array<i64: 1, 8>}, {transform_indices = @transform_12, window_bounds = array<i64: 8, 8>}]} {
    %c0 = arith.constant 0 : index
    %c0_0 = arith.constant 0 : index
    %0 = vector.load %arg1[%c0, %c0_0] : memref<8x128xf32, #tpu.memory_space<vmem>>, vector<8x128xf32>
    %1 = arith.truncf %0 : vector<8x128xf32> to vector<8x128xbf16>
    %c0_1 = arith.constant 0 : index
    %c0_2 = arith.constant 0 : index
    %2 = vector.load %arg2[%c0_1, %c0_2] : memref<128x512xbf16, #tpu.memory_space<vmem>>, vector<128x512xbf16>
    %cst = arith.constant dense<0.000000e+00> : vector<8x512xf32>
    %3 = tpu.matmul %1, %2, %cst {dimension_numbers = #tpu.dot_dimension_numbers<[1], [0], [0], [1], [0, 0, 1, 1], [], []>} : vector<8x128xbf16>, vector<128x512xbf16>, vector<8x512xf32> -> vector<8x512xf32>
    %c0_3 = arith.constant 0 : index
    %c0_4 = arith.constant 0 : index
    %4 = vector.load %arg3[%c0_3, %c0_4] : memref<1x512xf32, #tpu.memory_space<vmem>>, vector<1x512xf32>
    %5 = vector.broadcast %4 : vector<1x512xf32> to vector<8x512xf32>
    %6 = arith.addf %3, %5 : vector<8x512xf32>
    %cst_5 = arith.constant 0.000000e+00 : f32
    %7 = vector.broadcast %cst_5 : f32 to vector<8x512xf32>
    %8 = arith.maximumf %6, %7 : vector<8x512xf32>
    %9 = arith.truncf %8 : vector<8x512xf32> to vector<8x512xbf16>
    %c0_6 = arith.constant 0 : index
    %c0_7 = arith.constant 0 : index
    %10 = vector.load %arg4[%c0_6, %c0_7] : memref<512x128xbf16, #tpu.memory_space<vmem>>, vector<512x128xbf16>
    %cst_8 = arith.constant dense<0.000000e+00> : vector<8x128xf32>
    %11 = tpu.matmul %9, %10, %cst_8 {dimension_numbers = #tpu.dot_dimension_numbers<[1], [0], [0], [1], [0, 0, 1, 1], [], []>} : vector<8x512xbf16>, vector<512x128xbf16>, vector<8x128xf32> -> vector<8x128xf32>
    %c0_9 = arith.constant 0 : index
    %c0_10 = arith.constant 0 : index
    %12 = vector.load %arg5[%c0_9, %c0_10] : memref<1x128xf32, #tpu.memory_space<vmem>>, vector<1x128xf32>
    %13 = vector.broadcast %12 : vector<1x128xf32> to vector<8x128xf32>
    %14 = arith.addf %11, %13 : vector<8x128xf32>
    %cst_11 = arith.constant 0.000000e+00 : f32
    %15 = vector.broadcast %cst_11 : f32 to vector<8x128xf32>
    %16 = arith.maximumf %14, %15 : vector<8x128xf32>
    %17 = arith.truncf %16 : vector<8x128xf32> to vector<8x128xbf16>
    %c0_12 = arith.constant 0 : index
    %c0_13 = arith.constant 0 : index
    %18 = vector.load %arg6[%c0_12, %c0_13] : memref<128x128xbf16, #tpu.memory_space<vmem>>, vector<128x128xbf16>
    %cst_14 = arith.constant dense<0.000000e+00> : vector<8x128xf32>
    %19 = tpu.matmul %17, %18, %cst_14 {dimension_numbers = #tpu.dot_dimension_numbers<[1], [0], [0], [1], [0, 0, 1, 1], [], []>} : vector<8x128xbf16>, vector<128x128xbf16>, vector<8x128xf32> -> vector<8x128xf32>
    %c0_15 = arith.constant 0 : index
    %c0_16 = arith.constant 0 : index
    %20 = vector.load %arg7[%c0_15, %c0_16] : memref<1x128xf32, #tpu.memory_space<vmem>>, vector<1x128xf32>
    %21 = vector.broadcast %20 : vector<1x128xf32> to vector<8x128xf32>
    %22 = arith.addf %19, %21 : vector<8x128xf32>
    %cst_17 = arith.constant 0.000000e+00 : f32
    %23 = vector.broadcast %cst_17 : f32 to vector<8x128xf32>
    %24 = arith.maximumf %22, %23 : vector<8x128xf32>
    %25 = arith.truncf %24 : vector<8x128xf32> to vector<8x128xbf16>
    %c0_18 = arith.constant 0 : index
    %c0_19 = arith.constant 0 : index
    %26 = vector.load %arg8[%c0_18, %c0_19] : memref<128x128xbf16, #tpu.memory_space<vmem>>, vector<128x128xbf16>
    %cst_20 = arith.constant dense<0.000000e+00> : vector<8x128xf32>
    %27 = tpu.matmul %25, %26, %cst_20 {dimension_numbers = #tpu.dot_dimension_numbers<[1], [0], [0], [1], [0, 0, 1, 1], [], []>} : vector<8x128xbf16>, vector<128x128xbf16>, vector<8x128xf32> -> vector<8x128xf32>
    %c0_21 = arith.constant 0 : index
    %c0_22 = arith.constant 0 : index
    %28 = vector.load %arg9[%c0_21, %c0_22] : memref<1x128xf32, #tpu.memory_space<vmem>>, vector<1x128xf32>
    %29 = vector.broadcast %28 : vector<1x128xf32> to vector<8x128xf32>
    %30 = arith.addf %27, %29 : vector<8x128xf32>
    %cst_23 = arith.constant 0.000000e+00 : f32
    %31 = vector.broadcast %cst_23 : f32 to vector<8x128xf32>
    %32 = arith.maximumf %30, %31 : vector<8x128xf32>
    %33 = arith.truncf %32 : vector<8x128xf32> to vector<8x128xbf16>
    %34 = arith.extf %33 : vector<8x128xbf16> to vector<8x128xf32>
    %c0_24 = arith.constant 0 : index
    %c0_25 = arith.constant 0 : index
    %35 = vector.load %arg10[%c0_24, %c0_25] : memref<128x8xf32, #tpu.memory_space<vmem>>, vector<128x8xf32>
    %cst_26 = arith.constant dense<0.000000e+00> : vector<8x8xf32>
    %36 = tpu.matmul %34, %35, %cst_26 {dimension_numbers = #tpu.dot_dimension_numbers<[1], [0], [0], [1], [0, 0, 1, 1], [], []>} : vector<8x128xf32>, vector<128x8xf32>, vector<8x8xf32> -> vector<8x8xf32>
    %c0_27 = arith.constant 0 : index
    %c0_28 = arith.constant 0 : index
    %37 = vector.load %arg11[%c0_27, %c0_28] : memref<128x8xf32, #tpu.memory_space<vmem>>, vector<128x8xf32>
    %cst_29 = arith.constant dense<0.000000e+00> : vector<8x8xf32>
    %38 = tpu.matmul %0, %37, %cst_29 {dimension_numbers = #tpu.dot_dimension_numbers<[1], [0], [0], [1], [0, 0, 1, 1], [], []>} : vector<8x128xf32>, vector<128x8xf32>, vector<8x8xf32> -> vector<8x8xf32>
    %39 = arith.addf %36, %38 : vector<8x8xf32>
    %c0_30 = arith.constant 0 : index
    %c0_31 = arith.constant 0 : index
    %40 = vector.load %arg12[%c0_30, %c0_31] : memref<1x8xf32, #tpu.memory_space<vmem>>, vector<1x8xf32>
    %41 = vector.broadcast %40 : vector<1x8xf32> to vector<8x8xf32>
    %42 = arith.addf %39, %41 : vector<8x8xf32>
    %43 = tpu.iota {dimensions = array<i32: 1>} : vector<8x8xi32>
    %cst_32 = arith.constant -2.000000e+01 : f32
    %cst_33 = arith.constant 2.000000e+00 : f32
    %44 = vector.broadcast %cst_32 : f32 to vector<8x8xf32>
    %45 = arith.maximumf %44, %42 : vector<8x8xf32>
    %46 = vector.broadcast %cst_33 : f32 to vector<8x8xf32>
    %47 = arith.minimumf %46, %45 : vector<8x8xf32>
    %c2_i32 = arith.constant 2 : i32
    %48 = vector.broadcast %c2_i32 : i32 to vector<8x8xi32>
    %49 = arith.cmpi slt, %43, %48 : vector<8x8xi32>
    %50 = arith.select %49, %42, %47 : vector<8x8xi1>, vector<8x8xf32>
    %c0_34 = arith.constant 0 : index
    %c0_35 = arith.constant 0 : index
    %51 = vector.load %arg13[%c0_34, %c0_35] : memref<8x8xf32, #tpu.memory_space<vmem>>, vector<8x8xf32>
    tpu.vector_store %arg13[%c0_34, %c0_35], %50 {strides = array<i32>} : memref<8x8xf32, #tpu.memory_space<vmem>>, vector<8x8xf32>,
    return
  }
  func.func @transform_0(%arg0: i32) -> (i32, i32) {
    %c0_i32 = arith.constant 0 : i32
    %c0_i32_0 = arith.constant 0 : i32
    return %arg0, %c0_i32 : i32, i32
  }
  func.func @transform_1(%arg0: i32) -> (i32, i32) {
    %c0_i32 = arith.constant 0 : i32
    %c0_i32_0 = arith.constant 0 : i32
    %c0_i32_1 = arith.constant 0 : i32
    return %c0_i32, %c0_i32_0 : i32, i32
  }
  func.func @transform_2(%arg0: i32) -> (i32, i32) {
    %c0_i32 = arith.constant 0 : i32
    %c0_i32_0 = arith.constant 0 : i32
    %c0_i32_1 = arith.constant 0 : i32
    return %c0_i32, %c0_i32_0 : i32, i32
  }
  func.func @transform_3(%arg0: i32) -> (i32, i32) {
    %c0_i32 = arith.constant 0 : i32
    %c0_i32_0 = arith.constant 0 : i32
    %c0_i32_1 = arith.constant 0 : i32
    return %c0_i32, %c0_i32_0 : i32, i32
  }
  func.func @transform_4(%arg0: i32) -> (i32, i32) {
    %c0_i32 = arith.constant 0 : i32
    %c0_i32_0 = arith.constant 0 : i32
    %c0_i32_1 = arith.constant 0 : i32
    return %c0_i32, %c0_i32_0 : i32, i32
  }
  func.func @transform_5(%arg0: i32) -> (i32, i32) {
    %c0_i32 = arith.constant 0 : i32
    %c0_i32_0 = arith.constant 0 : i32
    %c0_i32_1 = arith.constant 0 : i32
    return %c0_i32, %c0_i32_0 : i32, i32
  }
  func.func @transform_6(%arg0: i32) -> (i32, i32) {
    %c0_i32 = arith.constant 0 : i32
    %c0_i32_0 = arith.constant 0 : i32
    %c0_i32_1 = arith.constant 0 : i32
    return %c0_i32, %c0_i32_0 : i32, i32
  }
  func.func @transform_7(%arg0: i32) -> (i32, i32) {
    %c0_i32 = arith.constant 0 : i32
    %c0_i32_0 = arith.constant 0 : i32
    %c0_i32_1 = arith.constant 0 : i32
    return %c0_i32, %c0_i32_0 : i32, i32
  }
  func.func @transform_8(%arg0: i32) -> (i32, i32) {
    %c0_i32 = arith.constant 0 : i32
    %c0_i32_0 = arith.constant 0 : i32
    %c0_i32_1 = arith.constant 0 : i32
    return %c0_i32, %c0_i32_0 : i32, i32
  }
  func.func @transform_9(%arg0: i32) -> (i32, i32) {
    %c0_i32 = arith.constant 0 : i32
    %c0_i32_0 = arith.constant 0 : i32
    %c0_i32_1 = arith.constant 0 : i32
    return %c0_i32, %c0_i32_0 : i32, i32
  }
  func.func @transform_10(%arg0: i32) -> (i32, i32) {
    %c0_i32 = arith.constant 0 : i32
    %c0_i32_0 = arith.constant 0 : i32
    %c0_i32_1 = arith.constant 0 : i32
    return %c0_i32, %c0_i32_0 : i32, i32
  }
  func.func @transform_11(%arg0: i32) -> (i32, i32) {
    %c0_i32 = arith.constant 0 : i32
    %c0_i32_0 = arith.constant 0 : i32
    %c0_i32_1 = arith.constant 0 : i32
    return %c0_i32, %c0_i32_0 : i32, i32
  }
  func.func @transform_12(%arg0: i32) -> (i32, i32) {
    %c0_i32 = arith.constant 0 : i32
    %c0_i32_0 = arith.constant 0 : i32
    return %arg0, %c0_i32 : i32, i32
  }
}

</mosaic_0001>

<bundles_post_ra>
// kernel: stochastic_policy_forward.1
= control target key start
LH: loop header
LB: loop body
LE: loop exit
PB: predicated region body
PF: predicated region fallthrough
CT: control target
= control target key end

     0   :  { %17 = vsyncpa [#allocation3], 0  ;;  %s1839_s0 = inlined_call_operand.vmem [shape: f32[2,128], index: 0, kind: input, shape index: {}]   ;;  %s1840_s1 = inlined_call_operand.vmem [shape: bf16[128,512], index: 1, kind: input, shape index: {}]   ;;  %s1841_s2 = inlined_call_operand.vmem [shape: f32[1,512], index: 2, kind: input, shape index: {}]   ;;  %s1842_s3 = inlined_call_operand.hbm [shape: bf16[512,128], index: 3, kind: input, shape index: {}]   ;;  %s1843_s4 = inlined_call_operand.vmem [shape: f32[1,128], index: 4, kind: input, shape index: {}]   ;;  %s1844_s5 = inlined_call_operand.hbm [shape: bf16[128,128], index: 5, kind: input, shape index: {}]   ;;  %s1845_s6 = inlined_call_operand.vmem [shape: f32[1,128], index: 6, kind: input, shape index: {}]   ;;  %s1846_s7 = inlined_call_operand.hbm [shape: bf16[128,128], index: 7, kind: input, shape index: {}]   ;;  %s1847_s8 = inlined_call_operand.vmem [shape: f32[1,128], index: 8, kind: input, shape index: {}]   ;;  %s1848_s9 = inlined_call_operand.vmem [shape: f32[128,8], index: 9, kind: input, shape index: {}]   ;;  %s1849_s10 = inlined_call_operand.vmem [shape: f32[128,8], index: 10, kind: input, shape index: {}]   ;;  %s1850_s11 = inlined_call_operand.vmem [shape: f32[1,8], index: 11, kind: input, shape index: {}]   ;;  %s1851_s12 = inlined_call_operand.vmem [shape: f32[2,8], index: 12, kind: output, shape index: {}]  }
   0x1   :  { %18 = vsyncpa [#allocation5], 0  ;;  %s44_s23 = sshll.u32 %s1844_s5, 4  ;;  %s1446_s24 = smov [#allocation4]   ;;  %s45_s23 = int_to_ptr.hbm [resolvable:$true] %s44_s23 }
   0x2   :  { %s46_s25 = sshll.u32 %s1446_s24, 4  ;;  %s29_s28 = sshll.u32 %s1842_s3, 4  ;;  %s47_s25 = int_to_ptr.vmem [resolvable:$true] %s46_s25  ;;  %s30_s28 = int_to_ptr.hbm [resolvable:$true] %s29_s28 }
   0x3   :  { %s1447_s29 = smov 64   ;;  %s1448_s30 = smov 4  }
   0x4   :  { %52 = dma.hbm_to_vmem [thread:$0]  %s45_s23, 1024, %s47_s25, [#allocation5], %s1447_s29, %s1447_s29, %s1448_s30  }
   0x5   :  { %s1449_s13 = smov [#allocation2]   ;;  %s59_s17 = sshll.u32 %s1846_s7, 4  ;;  %s60_s17 = int_to_ptr.hbm [resolvable:$true] %s59_s17 }
   0x6   :  { %s31_s14 = sshll.u32 %s1449_s13, 4  ;;  %s1450_s5 = smov [#allocation6]   ;;  %s32_s14 = int_to_ptr.vmem [resolvable:$true] %s31_s14 }
   0x7   :  { %37 = dma.hbm_to_vmem [thread:$0]  %s30_s28, 4096, %s32_s14, [#allocation3], %s1447_s29, %s1447_s29, %s1448_s30  }
   0x8   :  { %s61_s18 = sshll.u32 %s1450_s5, 4  ;;  %s62_s18 = int_to_ptr.vmem [resolvable:$true] %s61_s18 }
   0x9   :  { %67 = dma.hbm_to_vmem [thread:$0]  %s60_s17, 1024, %s62_s18, [#allocation5], %s1447_s29, %s1447_s29, %s1448_s30  }
   0xa   :  { %1442 = dma.done.wait [#allocation3], 4096  }
   0xb   :  { %1443 = vsyncadd [#allocation3], 4294963200 }
   0xc   :  { %1444 = dma.done.wait [#allocation5], 2048  }
   0xd   :  { %1445 = vsyncadd [#allocation5], 4294965248  ;;  %v1075_v0 = vld [vmem:[%s1840_s1 + $0xe0] sm:$0xf]  ;;  %v1311_v1 = vld [vmem:[%s1840_s1 + $0xec] sm:$0xf0] }
   0xe   :  { %v1083_v2 = vld [vmem:[%s1840_s1 + $0xe8] sm:$0xf]  ;;  %v1076_v3 = vor.u32 %v1311_v1, %v1075_v0  ;;  %v1312_v4 = vld [vmem:[%s1840_s1 + $0xf4] sm:$0xf0]  ;;  %v1310_v5 = vld [vmem:[%s1840_s1 + $0xec] sm:$0xf] }
   0xf   :  { %v1085_v6 = vld [vmem:[%s1840_s1 + $0xf8] sm:$0xf0]  ;;  %v1084_v7 = vor.u32 %v1312_v4, %v1083_v2  ;;  %v1309_v9 = vld [vmem:[%s1840_s1 + $0xe4] sm:$0xf]  ;;  %v1077_v10 = vld [vmem:[%s1840_s1 + $0xf0] sm:$0xf0] }
  0x10   :  { %v1088_v8 = vor.u32 %v1310_v5, %v1085_v6  ;;  %v1059_v11 = vld [vmem:[%s1840_s1 + $0xc0] sm:$0xf]  ;;  %292 = vmatpush.bf16.msra.mxu0 %v1076_v3  ;;  %v1080_v12 = vor.u32 %v1309_v9, %v1077_v10  ;;  %v1307_v13 = vld [vmem:[%s1840_s1 + $0xcc] sm:$0xf0]  ;;  %v1067_v14 = vld [vmem:[%s1840_s1 + $0xc8] sm:$0xf] }
  0x11   :  { %v1308_v15 = vld [vmem:[%s1840_s1 + $0xd4] sm:$0xf0]  ;;  %318 = vmatpush.bf16.msra.mxu2 %v1084_v7  ;;  %v1060_v16 = vor.u32 %v1307_v13, %v1059_v11  ;;  %v1306_v18 = vld [vmem:[%s1840_s1 + $0xcc] sm:$0xf]  ;;  %v1069_v19 = vld [vmem:[%s1840_s1 + $0xd8] sm:$0xf0] }
  0x12   :  { %331 = vmatpush.bf16.msra.mxu3 %v1088_v8  ;;  %v1068_v17 = vor.u32 %v1308_v15, %v1067_v14  ;;  %v1305_v20 = vld [vmem:[%s1840_s1 + $0xc4] sm:$0xf]  ;;  %305 = vmatpush.bf16.msra.mxu1 %v1080_v12  ;;  %v1072_v21 = vor.u32 %v1306_v18, %v1069_v19  ;;  %v1061_v22 = vld [vmem:[%s1840_s1 + $0xd0] sm:$0xf0]  ;;  %v1043_v23 = vld [vmem:[%s1840_s1 + $0xa0] sm:$0xf] }
  0x13   :  { %v1303_v24 = vld [vmem:[%s1840_s1 + $0xac] sm:$0xf0]  ;;  %v1064_v25 = vor.u32 %v1305_v20, %v1061_v22  ;;  %v1051_v26 = vld [vmem:[%s1840_s1 + $0xa8] sm:$0xf]  ;;  %v1304_v27 = vld [vmem:[%s1840_s1 + $0xb4] sm:$0xf0] }
  0x14   :  { %v1302_v28 = vld [vmem:[%s1840_s1 + $0xac] sm:$0xf]  ;;  %293 = vmatpush.bf16.msra.mxu0 %v1060_v16  ;;  %v1044_v29 = vor.u32 %v1303_v24, %v1043_v23  ;;  %v1053_v30 = vld [vmem:[%s1840_s1 + $0xb8] sm:$0xf0]  ;;  %v1301_v31 = vld [vmem:[%s1840_s1 + $0xa4] sm:$0xf]  ;;  %v1052_v33 = vor.u32 %v1304_v27, %v1051_v26 }
  0x15   :  { %v1045_v32 = vld [vmem:[%s1840_s1 + $0xb0] sm:$0xf0]  ;;  %319 = vmatpush.bf16.msra.mxu2 %v1068_v17  ;;  %v1056_v34 = vor.u32 %v1302_v28, %v1053_v30  ;;  %v1027_v35 = vld [vmem:[%s1840_s1 + $0x80] sm:$0xf]  ;;  %v1299_v36 = vld [vmem:[%s1840_s1 + $0x8c] sm:$0xf0] }
  0x16   :  { %332 = vmatpush.bf16.msra.mxu3 %v1072_v21  ;;  %v1035_v37 = vld [vmem:[%s1840_s1 + $0x88] sm:$0xf]  ;;  %306 = vmatpush.bf16.msra.mxu1 %v1064_v25  ;;  %v1048_v38 = vor.u32 %v1301_v31, %v1045_v32  ;;  %v1300_v39 = vld [vmem:[%s1840_s1 + $0x94] sm:$0xf0]  ;;  %v1298_v40 = vld [vmem:[%s1840_s1 + $0x8c] sm:$0xf]  ;;  %v1028_v44 = vor.u32 %v1299_v36, %v1027_v35 }
  0x17   :  { %v1037_v41 = vld [vmem:[%s1840_s1 + $0x98] sm:$0xf0]  ;;  %v1297_v42 = vld [vmem:[%s1840_s1 + $0x84] sm:$0xf]  ;;  %v1029_v43 = vld [vmem:[%s1840_s1 + $0x90] sm:$0xf0]  ;;  %v1036_v45 = vor.u32 %v1300_v39, %v1035_v37 }
  0x18   :  { %294 = vmatpush.bf16.msra.mxu0 %v1044_v29  ;;  %v1040_v46 = vor.u32 %v1298_v40, %v1037_v41  ;;  %v1011_v47 = vld [vmem:[%s1840_s1 + $0x60] sm:$0xf]  ;;  %v1295_v48 = vld [vmem:[%s1840_s1 + $0x6c] sm:$0xf0]  ;;  %v1019_v49 = vld [vmem:[%s1840_s1 + $0x68] sm:$0xf]  ;;  %v1032_v50 = vor.u32 %v1297_v42, %v1029_v43 }
  0x19   :  { %320 = vmatpush.bf16.msra.mxu2 %v1052_v33  ;;  %v1296_v51 = vld [vmem:[%s1840_s1 + $0x74] sm:$0xf0]  ;;  %v1294_v52 = vld [vmem:[%s1840_s1 + $0x6c] sm:$0xf]  ;;  %v1021_v53 = vld [vmem:[%s1840_s1 + $0x78] sm:$0xf0]  ;;  %v1012_v56 = vor.u32 %v1295_v48, %v1011_v47 }
  0x1a   :  { %333 = vmatpush.bf16.msra.mxu3 %v1056_v34  ;;  %307 = vmatpush.bf16.msra.mxu1 %v1048_v38  ;;  %v1293_v54 = vld [vmem:[%s1840_s1 + $0x64] sm:$0xf]  ;;  %v1013_v55 = vld [vmem:[%s1840_s1 + $0x70] sm:$0xf0]  ;;  %v1020_v57 = vor.u32 %v1296_v51, %v1019_v49  ;;  %v1024_v58 = vor.u32 %v1294_v52, %v1021_v53  ;;  %v995_v59 = vld [vmem:[%s1840_s1 + $0x40] sm:$0xf] }
  0x1b   :  { %v1291_v60 = vld [vmem:[%s1840_s1 + $0x4c] sm:$0xf0]  ;;  %v1003_v61 = vld [vmem:[%s1840_s1 + $0x48] sm:$0xf]  ;;  %v1016_v62 = vor.u32 %v1293_v54, %v1013_v55  ;;  %v1292_v63 = vld [vmem:[%s1840_s1 + $0x54] sm:$0xf0] }
  0x1c   :  { %295 = vmatpush.bf16.msra.mxu0 %v1028_v44  ;;  %v1290_v0 = vld [vmem:[%s1840_s1 + $0x4c] sm:$0xf]  ;;  %v1005_v1 = vld [vmem:[%s1840_s1 + $0x58] sm:$0xf0]  ;;  %v1289_v2 = vld [vmem:[%s1840_s1 + $0x44] sm:$0xf]  ;;  %v996_v4 = vor.u32 %v1291_v60, %v995_v59  ;;  %v1004_v5 = vor.u32 %v1292_v63, %v1003_v61 }
  0x1d   :  { %321 = vmatpush.bf16.msra.mxu2 %v1036_v45  ;;  %v997_v3 = vld [vmem:[%s1840_s1 + $0x50] sm:$0xf0]  ;;  %v1008_v6 = vor.u32 %v1290_v0, %v1005_v1  ;;  %v979_v7 = vld [vmem:[%s1840_s1 + $0x20] sm:$0xf]  ;;  %v1287_v8 = vld [vmem:[%s1840_s1 + $0x2c] sm:$0xf0] }
  0x1e   :  { %334 = vmatpush.bf16.msra.mxu3 %v1040_v46  ;;  %308 = vmatpush.bf16.msra.mxu1 %v1032_v50  ;;  %v987_v9 = vld [vmem:[%s1840_s1 + $0x28] sm:$0xf]  ;;  %v1000_v10 = vor.u32 %v1289_v2, %v997_v3  ;;  %v1288_v11 = vld [vmem:[%s1840_s1 + $0x34] sm:$0xf0]  ;;  %v1286_v12 = vld [vmem:[%s1840_s1 + $0x2c] sm:$0xf]  ;;  %v980_v16 = vor.u32 %v1287_v8, %v979_v7 }
  0x1f   :  { %v989_v13 = vld [vmem:[%s1840_s1 + $0x38] sm:$0xf0]  ;;  %v1285_v14 = vld [vmem:[%s1840_s1 + $0x24] sm:$0xf]  ;;  %v981_v15 = vld [vmem:[%s1840_s1 + $0x30] sm:$0xf0]  ;;  %v988_v17 = vor.u32 %v1288_v11, %v987_v9 }
  0x20   :  { %296 = vmatpush.bf16.msra.mxu0 %v1012_v56  ;;  %v992_v18 = vor.u32 %v1286_v12, %v989_v13  ;;  %v963_v19 = vld [vmem:[%s1840_s1] sm:$0xf]  ;;  %v1283_v20 = vld [vmem:[%s1840_s1 + $0xc] sm:$0xf0]  ;;  %v971_v21 = vld [vmem:[%s1840_s1 + $0x8] sm:$0xf]  ;;  %v984_v22 = vor.u32 %v1285_v14, %v981_v15 }
  0x21   :  { %322 = vmatpush.bf16.msra.mxu2 %v1020_v57  ;;  %v1284_v23 = vld [vmem:[%s1840_s1 + $0x14] sm:$0xf0]  ;;  %v1282_v24 = vld [vmem:[%s1840_s1 + $0xc] sm:$0xf]  ;;  %v973_v25 = vld [vmem:[%s1840_s1 + $0x18] sm:$0xf0]  ;;  %v964_v28 = vor.u32 %v1283_v20, %v963_v19 }
  0x22   :  { %335 = vmatpush.bf16.msra.mxu3 %v1024_v58  ;;  %309 = vmatpush.bf16.msra.mxu1 %v1016_v62  ;;  %v1281_v26 = vld [vmem:[%s1840_s1 + $0x4] sm:$0xf]  ;;  %v965_v27 = vld [vmem:[%s1840_s1 + $0x10] sm:$0xf0]  ;;  %v972_v30 = vor.u32 %v1284_v23, %v971_v21  ;;  %v976_v31 = vor.u32 %v1282_v24, %v973_v25  ;;  %v1320_v33 = vld [vmem:[#allocation2 + $0x38] sm:$0xff]  ;;  %vm916_vm1 = vcmask 64512  }
  0x23   :  { %v1720_v29 = vld [vmem:[%s1839_s0] sm:$0xff]  ;;  %v968_v32 = vor.u32 %v1281_v26, %v965_v27  ;;  %v1328_v35 = vld [vmem:[#allocation2 + $0x78] sm:$0xff]  ;;  %v1319_v37 = vld [vmem:[#allocation2 + $0x30] sm:$0xff] }
  0x24   :  { %297 = vmatpush.bf16.msra.mxu0 %v996_v4  ;;  %v89_v34 = vpack.c.bf16 %v1720_v29, %v1720_v29  ;;  %v1336_v36 = vld [vmem:[#allocation2 + $0xb8] sm:$0xff]  ;;  %v1327_v39 = vld [vmem:[#allocation2 + $0x70] sm:$0xff]  ;;  %v1318_v41 = vld [vmem:[#allocation2 + $0x28] sm:$0xff] }
  0x25   :  { %323 = vmatpush.bf16.msra.mxu2 %v1004_v5  ;;  %v1344_v38 = vld [vmem:[#allocation2 + $0xf8] sm:$0xff]  ;;  %v1335_v40 = vld [vmem:[#allocation2 + $0xb0] sm:$0xff]  ;;  %v1326_v43 = vld [vmem:[#allocation2 + $0x68] sm:$0xff] }
  0x26   :  { %336 = vmatpush.bf16.msra.mxu3 %v1008_v6  ;;  %310 = vmatpush.bf16.msra.mxu1 %v1000_v10  ;;  %v1343_v42 = vld [vmem:[#allocation2 + $0xf0] sm:$0xff]  ;;  %v1334_v44 = vld [vmem:[#allocation2 + $0xa8] sm:$0xff]  ;;  %v1317_v45 = vld [vmem:[#allocation2 + $0x20] sm:$0xff] }
  0x27   :  { %v1342_v46 = vld [vmem:[#allocation2 + $0xe8] sm:$0xff]  ;;  %v1325_v47 = vld [vmem:[#allocation2 + $0x60] sm:$0xff]  ;;  %v1316_v49 = vld [vmem:[#allocation2 + $0x18] sm:$0xff] }
  0x28   :  { %298 = vmatpush.bf16.msra.mxu0 %v980_v16  ;;  %v1333_v48 = vld [vmem:[#allocation2 + $0xa0] sm:$0xff]  ;;  %v1324_v51 = vld [vmem:[#allocation2 + $0x58] sm:$0xff]  ;;  %v1315_v53 = vld [vmem:[#allocation2 + $0x10] sm:$0xff] }
  0x29   :  { %324 = vmatpush.bf16.msra.mxu2 %v988_v17  ;;  %v1341_v50 = vld [vmem:[#allocation2 + $0xe0] sm:$0xff]  ;;  %v1332_v52 = vld [vmem:[#allocation2 + $0x98] sm:$0xff]  ;;  %v1323_v55 = vld [vmem:[#allocation2 + $0x50] sm:$0xff] }
  0x2a   :  { %337 = vmatpush.bf16.msra.mxu3 %v992_v18  ;;  %311 = vmatpush.bf16.msra.mxu1 %v984_v22  ;;  %v1340_v54 = vld [vmem:[#allocation2 + $0xd8] sm:$0xff]  ;;  %v1314_v56 = vld [vmem:[#allocation2 + $0x8] sm:$0xff]  ;;  %v1331_v58 = vld [vmem:[#allocation2 + $0x90] sm:$0xff] }
  0x2b   :  { %v1322_v57 = vld [vmem:[#allocation2 + $0x48] sm:$0xff]  ;;  %v1339_v59 = vld [vmem:[#allocation2 + $0xd0] sm:$0xff]  ;;  %v1313_v60 = vld [vmem:[#allocation2] sm:$0xff] }
  0x2c   :  { %299 = vmatpush.bf16.msra.mxu0 %v964_v28  ;;  %v1321_v61 = vld [vmem:[#allocation2 + $0x40] sm:$0xff]  ;;  %v1330_v62 = vld [vmem:[#allocation2 + $0x88] sm:$0xff]  ;;  %v1352_v2 = vld [vmem:[#allocation4 + $0x38] sm:$0xff] }
  0x2d   :  { %325 = vmatpush.bf16.msra.mxu2 %v972_v30  ;;  %v1338_v63 = vld [vmem:[#allocation2 + $0xc8] sm:$0xff]  ;;  %v1329_v0 = vld [vmem:[#allocation2 + $0x80] sm:$0xff]  ;;  %v1351_v3 = vld [vmem:[#allocation4 + $0x30] sm:$0xff] }
  0x2e   :  { %338 = vmatpush.bf16.msra.mxu3 %v976_v31  ;;  %312 = vmatpush.bf16.msra.mxu1 %v968_v32  ;;  %v1337_v1 = vld [vmem:[#allocation2 + $0xc0] sm:$0xff]  ;;  %v1350_v4 = vld [vmem:[#allocation4 + $0x28] sm:$0xff]  ;;  %v1348_v32 = vld [vmem:[#allocation4 + $0x18] sm:$0xff] }
  0x2f   :  { %300 = vmatmul.bf16.vlgmr.msra.gmra.mxu0 %v89_v34  ;;  %v122_v5 = vld [vmem:[%s1841_s2] sm:$0xf] }
  0x30   :  { %612 = vmatpush.bf16.msrb.mxu0 %v1320_v33  ;;  %326 = vmatmul.bf16.vlgmr.msra.gmra.mxu2 %v89_v34  ;;  %v124_v6 = vperm.slane %v122_v5, 0  ;;  %v125_v7 = vperm.slane %v122_v5, 1  ;;  %v126_v13 = vperm.slane %v122_v5, 2  ;;  %v127_v14 = vperm.slane %v122_v5, 3  ;;  %v1349_v31 = vld [vmem:[#allocation4 + $0x20] sm:$0xff]  ;;  %v1347_v33 = vld [vmem:[#allocation4 + $0x10] sm:$0xff] }
  0x31   :  { %339 = vmatmul.bf16.vlgmr.msra.gmra.mxu3 %v89_v34  ;;  %313 = vmatmul.bf16.vlgmr.msra.gmra.mxu1 %v89_v34  ;;  %v1346_v34 = vld [vmem:[#allocation4 + $0x8] sm:$0xff]  ;;  %v859_v5 = vld [vmem:[%s1849_s10 + $0x50] sm:$0xff] }
  0x32   :  { %625 = vmatpush.bf16.msrb.mxu1 %v1328_v35  ;;  %638 = vmatpush.bf16.msrb.mxu2 %v1336_v36  ;;  %v1345_v35 = vld [vmem:[#allocation4] sm:$0xff]  ;;  %v1360_v36 = vld [vmem:[#allocation6 + $0x38] sm:$0xff] }
  0x33   :  { %651 = vmatpush.bf16.msrb.mxu3 %v1344_v38  ;;  %v1358_v38 = vld [vmem:[#allocation6 + $0x28] sm:$0xff] }
  0x34   :  { %613 = vmatpush.bf16.msrb.mxu0 %v1319_v37  ;;  %v1359_v37 = vld [vmem:[#allocation6 + $0x30] sm:$0xff] }
  0x36   :  { %626 = vmatpush.bf16.msrb.mxu1 %v1327_v39  ;;  %639 = vmatpush.bf16.msrb.mxu2 %v1335_v40  ;;  %v1357_v40 = vld [vmem:[#allocation6 + $0x20] sm:$0xff] }
  0x37   :  { %652 = vmatpush.bf16.msrb.mxu3 %v1343_v42 }
  0x38   :  { %614 = vmatpush.bf16.msrb.mxu0 %v1318_v41  ;;  %v1366_v41 = vld [vmem:[%s1843_s4] ss:$0 sm:$0xff] }
  0x3a   :  { %627 = vmatpush.bf16.msrb.mxu1 %v1326_v43  ;;  %640 = vmatpush.bf16.msrb.mxu2 %v1334_v44  ;;  %v1356_v43 = vld [vmem:[#allocation6 + $0x18] sm:$0xff] }
  0x3b   :  { %653 = vmatpush.bf16.msrb.mxu3 %v1342_v46  ;;  %v1355_v46 = vld [vmem:[#allocation6 + $0x10] sm:$0xff] }
  0x3c   :  { %615 = vmatpush.bf16.msrb.mxu0 %v1317_v45 }
  0x3e   :  { %628 = vmatpush.bf16.msrb.mxu1 %v1325_v47  ;;  %641 = vmatpush.bf16.msrb.mxu2 %v1333_v48 }
  0x3f   :  { %654 = vmatpush.bf16.msrb.mxu3 %v1341_v50 }
  0x40   :  { %616 = vmatpush.bf16.msrb.mxu0 %v1316_v49 }
  0x42   :  { %629 = vmatpush.bf16.msrb.mxu1 %v1324_v51  ;;  %642 = vmatpush.bf16.msrb.mxu2 %v1332_v52 }
  0x43   :  { %655 = vmatpush.bf16.msrb.mxu3 %v1340_v54 }
  0x44   :  { %617 = vmatpush.bf16.msrb.mxu0 %v1315_v53 }
  0x46   :  { %630 = vmatpush.bf16.msrb.mxu1 %v1323_v55  ;;  %643 = vmatpush.bf16.msrb.mxu2 %v1331_v58  ;;  %v1353_v58 = vld [vmem:[#allocation6] sm:$0xff] }
  0x47   :  { %656 = vmatpush.bf16.msrb.mxu3 %v1339_v59  ;;  %v864_v59 = vld [vmem:[%s1849_s10 + $0x78] sm:$0xff] }
  0x48   :  { %618 = vmatpush.bf16.msrb.mxu0 %v1314_v56 }
  0x4a   :  { %631 = vmatpush.bf16.msrb.mxu1 %v1322_v57  ;;  %644 = vmatpush.bf16.msrb.mxu2 %v1330_v62  ;;  %v1354_v57 = vld [vmem:[#allocation6 + $0x8] sm:$0xff]  ;;  %v847_v62 = vld [vmem:[%s1848_s9 + $0x70] sm:$0xff] }
  0x4b   :  { %657 = vmatpush.bf16.msrb.mxu3 %v1338_v63  ;;  %v862_v63 = vld [vmem:[%s1849_s10 + $0x68] sm:$0xff] }
  0x4c   :  { %619 = vmatpush.bf16.msrb.mxu0 %v1313_v60  ;;  %v848_v60 = vld [vmem:[%s1848_s9 + $0x78] sm:$0xff] }
  0x4e   :  { %632 = vmatpush.bf16.msrb.mxu1 %v1321_v61  ;;  %645 = vmatpush.bf16.msrb.mxu2 %v1329_v0  ;;  %v863_v61 = vld [vmem:[%s1849_s10 + $0x70] sm:$0xff]  ;;  %v846_v0 = vld [vmem:[%s1848_s9 + $0x68] sm:$0xff] }
  0x4f   :  { %658 = vmatpush.bf16.msrb.mxu3 %v1337_v1  ;;  %v861_v1 = vld [vmem:[%s1849_s10 + $0x60] sm:$0xff] }
  0x50   :  { %734 = vmatpush.bf16.msra.mxu0 %v1352_v2  ;;  %v845_v2 = vld [vmem:[%s1848_s9 + $0x60] sm:$0xff] }
  0x52   :  { %817 = vmatpush.bf16.msra.mxu1 %v1360_v36  ;;  %865 = vmatpush.msra.mxu2 %v864_v59 }
  0x53   :  { %885 = vmatpush.msra.mxu3 %v848_v60 }
  0x54   :  { %735 = vmatpush.bf16.msra.mxu0 %v1351_v3  ;;  %866 = vmatpush.msra.mxu2 %v863_v61  ;;  %v860_v3 = vld [vmem:[%s1849_s10 + $0x58] sm:$0xff] }
  0x55   :  { %886 = vmatpush.msra.mxu3 %v847_v62 }
  0x56   :  { %818 = vmatpush.bf16.msra.mxu1 %v1359_v37  ;;  %867 = vmatpush.msra.mxu2 %v862_v63 }
  0x57   :  { %887 = vmatpush.msra.mxu3 %v846_v0 }
  0x58   :  { %736 = vmatpush.bf16.msra.mxu0 %v1350_v4  ;;  %v844_v4 = vld [vmem:[%s1848_s9 + $0x58] sm:$0xff]  ;;  %868 = vmatpush.msra.mxu2 %v861_v1 }
  0x59   :  { %888 = vmatpush.msra.mxu3 %v845_v2 }
  0x5a   :  { %819 = vmatpush.bf16.msra.mxu1 %v1358_v38  ;;  %869 = vmatpush.msra.mxu2 %v860_v3 }
  0x5b   :  { %889 = vmatpush.msra.mxu3 %v844_v4 }
  0x5c   :  { %737 = vmatpush.bf16.msra.mxu0 %v1349_v31  ;;  %870 = vmatpush.msra.mxu2 %v859_v5  ;;  %v834_v31 = vld [vmem:[%s1848_s9 + $0x8] sm:$0xff] }
  0x5e   :  { %820 = vmatpush.bf16.msra.mxu1 %v1357_v40  ;;  %v910_v40 = vlaneseq }
  0x60   :  { %738 = vmatpush.bf16.msra.mxu0 %v1348_v32  ;;  %v849_v32 = vld [vmem:[%s1849_s10] sm:$0xff] }
  0x62   :  { %821 = vmatpush.bf16.msra.mxu1 %v1356_v43 }
  0x64   :  { %739 = vmatpush.bf16.msra.mxu0 %v1347_v33  ;;  %v833_v33 = vld [vmem:[%s1848_s9] sm:$0xff] }
  0x66   :  { %822 = vmatpush.bf16.msra.mxu1 %v1355_v46 }
  0x68   :  { %740 = vmatpush.bf16.msra.mxu0 %v1346_v34  ;;  %v1368_v34 = vld [vmem:[%s1847_s8] ss:$0 sm:$0xff] }
  0x6a   :  { %823 = vmatpush.bf16.msra.mxu1 %v1354_v57 }
  0x6c   :  { %741 = vmatpush.bf16.msra.mxu0 %v1345_v35 }
  0x6e   :  { %824 = vmatpush.bf16.msra.mxu1 %v1353_v58 }
  0xac   :  { %v301_v8 = vpop.f32.mrf.mxu0 }
  0xad   :  { %v302_v9 = vadd.f32 %v301_v8, %v124_v6  ;;  %v843_v6 = vld [vmem:[%s1848_s9 + $0x50] sm:$0xff]  ;;  %v842_v8 = vld [vmem:[%s1848_s9 + $0x48] sm:$0xff] }
  0xae   :  { %v314_v10 = vpop.f32.mrf.mxu1  ;;  %890 = vmatpush.msra.mxu3 %v843_v6 }
  0xaf   :  { %v344_v11 = vmax.f32 %v302_v9, 0.0  ;;  %v315_v12 = vadd.f32 %v314_v10, %v125_v7  ;;  %v858_v7 = vld [vmem:[%s1849_s10 + $0x48] sm:$0xff]  ;;  %v857_v9 = vld [vmem:[%s1849_s10 + $0x40] sm:$0xff] }
  0xb0   :  { %v841_v10 = vld [vmem:[%s1848_s9 + $0x40] sm:$0xff]  ;;  %871 = vmatpush.msra.mxu2 %v858_v7  ;;  %891 = vmatpush.msra.mxu3 %v842_v8 }
  0xb1   :  { %v348_v15 = vpack.c.bf16 %v344_v11, %v344_v11  ;;  %v345_v16 = vmax.f32 %v315_v12, 0.0  ;;  %v856_v11 = vld [vmem:[%s1849_s10 + $0x38] sm:$0xff] }
  0xb2   :  { %v840_v12 = vld [vmem:[%s1848_s9 + $0x38] sm:$0xff]  ;;  %872 = vmatpush.msra.mxu2 %v857_v9  ;;  %892 = vmatpush.msra.mxu3 %v841_v10 }
  0xb3   :  { %v349_v17 = vpack.c.bf16 %v345_v16, %v345_v16  ;;  %v327_v18 = vpop.f32.mrf.mxu2  ;;  %620 = vmatmul.bf16.vlgmr.msrb.gmra.mxu0 %v348_v15  ;;  %v854_v15 = vld [vmem:[%s1849_s10 + $0x28] sm:$0xff] }
  0xb4   :  { %v340_v19 = vpop.f32.mrf.mxu3  ;;  %v328_v20 = vadd.f32 %v327_v18, %v126_v13  ;;  %v303_v22 = vpop.f32.mrf.mxu0  ;;  %v855_v13 = vld [vmem:[%s1849_s10 + $0x30] sm:$0xff]  ;;  %873 = vmatpush.msra.mxu2 %v856_v11  ;;  %893 = vmatpush.msra.mxu3 %v840_v12  ;;  %v838_v16 = vld [vmem:[%s1848_s9 + $0x28] sm:$0xff]  ;;  %v837_v18 = vld [vmem:[%s1848_s9 + $0x20] sm:$0xff] }
  0xb5   :  { %v341_v21 = vadd.f32 %v340_v19, %v127_v14  ;;  %633 = vmatmul.bf16.vlgmr.msrb.gmra.mxu1 %v349_v17  ;;  %v839_v14 = vld [vmem:[%s1848_s9 + $0x30] sm:$0xff]  ;;  %v853_v17 = vld [vmem:[%s1849_s10 + $0x20] sm:$0xff] }
  0xb6   :  { %v346_v23 = vmax.f32 %v328_v20, 0.0  ;;  %v316_v25 = vpop.f32.mrf.mxu1  ;;  %874 = vmatpush.msra.mxu2 %v855_v13  ;;  %894 = vmatpush.msra.mxu3 %v839_v14  ;;  %v1367_v19 = vld [vmem:[%s1845_s6] ss:$0 sm:$0xff]  ;;  %v852_v20 = vld [vmem:[%s1849_s10 + $0x18] sm:$0xff] }
  0xb7   :  { %v347_v24 = vmax.f32 %v341_v21, 0.0  ;;  %v836_v21 = vld [vmem:[%s1848_s9 + $0x18] sm:$0xff] }
  0xb8   :  { %v350_v26 = vpack.c.bf16 %v346_v23, %v346_v23  ;;  %875 = vmatpush.msra.mxu2 %v854_v15  ;;  %895 = vmatpush.msra.mxu3 %v838_v16 }
  0xb9   :  { %v351_v27 = vpack.c.bf16 %v347_v24, %v347_v24 }
  0xba   :  { %646 = vmatmul.bf16.vlgmr.msrb.gmra.mxu2 %v350_v26  ;;  %896 = vmatpush.msra.mxu3 %v837_v18 }
  0xbb   :  { %659 = vmatmul.bf16.vlgmr.msrb.gmra.mxu3 %v351_v27  ;;  %v329_v28 = vpop.f32.mrf.mxu2  ;;  %876 = vmatpush.msra.mxu2 %v853_v17  ;;  %v851_v27 = vld [vmem:[%s1849_s10 + $0x10] sm:$0xff] }
  0xbc   :  { %v342_v30 = vpop.f32.mrf.mxu3  ;;  %897 = vmatpush.msra.mxu3 %v836_v21  ;;  %v835_v28 = vld [vmem:[%s1848_s9 + $0x10] sm:$0xff] }
  0xbd   :  { %877 = vmatpush.msra.mxu2 %v852_v20  ;;  %v850_v30 = vld [vmem:[%s1849_s10 + $0x8] sm:$0xff] }
  0xbe   :  { %898 = vmatpush.msra.mxu3 %v835_v28 }
  0xbf   :  { %878 = vmatpush.msra.mxu2 %v851_v27 }
  0xc0   :  { %899 = vmatpush.msra.mxu3 %v834_v31 }
  0xc1   :  { %879 = vmatpush.msra.mxu2 %v850_v30 }
  0xc2   :  { %900 = vmatpush.msra.mxu3 %v833_v33 }
  0xc3   :  { %880 = vmatpush.msra.mxu2 %v849_v32 }
  0xca   :  { %881 = vmatmul.f32.vlgmr.msra.gmra.mxu2 %v1720_v29 }
 0x130   :  { %v621_v39 = vpop.f32.mrf.mxu0 }
 0x131   :  { %v622_v44 = vadd.f32 %v1366_v41, %v621_v39  ;;  %v1369_v41 = vld [vmem:[%s1850_s11] ss:$0 sm:$0xff] }
 0x132   :  { %v634_v42 = vpop.f32.mrf.mxu1 }
 0x133   :  { %v635_v47 = vadd.f32 %v634_v42, %v622_v44  ;;  %v911_v44 = vand.u32 127, %v910_v40 }
 0x135   :  { %vm914_vm0 = vcmp.lt.s32.totalorder %v911_v44, 2 }
 0x138   :  { %v623_v45 = vpop.f32.mrf.mxu0 }
 0x13a   :  { %v636_v48 = vpop.f32.mrf.mxu1 }
 0x13d   :  { %v647_v49 = vpop.f32.mrf.mxu2 }
 0x13e   :  { %v660_v50 = vpop.f32.mrf.mxu3  ;;  %v648_v51 = vadd.f32 %v647_v49, %v635_v47 }
 0x140   :  { %v661_v52 = vadd.f32 %v660_v50, %v648_v51 }
 0x142   :  { %v664_v53 = vmax.f32 %v661_v52, 0.0 }
 0x144   :  { %v665_v54 = vpack.c.bf16 %v664_v53, %v664_v53 }
 0x145   :  { %v649_v55 = vpop.f32.mrf.mxu2 }
 0x146   :  { %v662_v56 = vpop.f32.mrf.mxu3  ;;  %742 = vmatmul.bf16.vlgmr.msra.gmra.mxu0 %v665_v54 }
 0x14d   :  { %v882_v39 = vpop.f32.mrf.mxu2 }
 0x1c3   :  { %v743_v22 = vpop.f32.mrf.mxu0 }
 0x1c4   :  { %v744_v23 = vadd.f32 %v1367_v19, %v743_v22 }
 0x1c6   :  { %v747_v24 = vmax.f32 %v744_v23, 0.0 }
 0x1c8   :  { %v748_v25 = vpack.c.bf16 %v747_v24, %v747_v24 }
 0x1ca   :  { %825 = vmatmul.bf16.vlgmr.msra.gmra.mxu1 %v748_v25 }
 0x1cb   :  { %v745_v26 = vpop.f32.mrf.mxu0 }
 0x247   :  { %v826_v35 = vpop.f32.mrf.mxu1 }
 0x248   :  { %v827_v36 = vadd.f32 %v1368_v34, %v826_v35 }
 0x24a   :  { %v830_v37 = vmax.f32 %v827_v36, 0.0 }
 0x24c   :  { %901 = vmatmul.f32.vlgmr.msra.gmra.mxu3 %v830_v37 }
 0x24f   :  { %v828_v38 = vpop.f32.mrf.mxu1 }
 0x2cf   :  { %v902_v42 = vpop.f32.mrf.mxu3 }
 0x2d0   :  { %v903_v43 = vadd.f32 %v902_v42, %v882_v39 }
 0x2d2   :  { %v909_v45 = vadd.f32 %v1369_v41, %v903_v43 }
 0x2d4   :  { %v912_v29 = vmax.f32 %v909_v45, -20.0 }
 0x2d6   :  { %v913_v46 = vmin.f32 %v912_v29, 2.0 }
 0x2d8   :  { %v915_v47 = vsel %vm914_vm0, %v909_v45, %v913_v46 }
 0x2d9   :  { %917 = vst.msk [vmem:[#allocation7] sm:$0xff] %vm916_vm1, %v915_v47 }
 0x2e0   :  { %v936_v48 = vld [vmem:[#allocation7] sm:$0x3] }
 0x2e1   :  { %937 = vst [vmem:[%s1851_s12] sm:$0x3] %v936_v48 }
 0x2e2   :  { %955 = vsyncpa [#allocation3], 1 }
 0x2e3   :  { %956 = vsyncpa [#allocation5], 1 }

</bundles_post_ra>
